<compile_context>
chip_gen: v5e
topology: v5e:2x2
jax: 0.10.0
libtpu: 0.0.40
codegen_flags: <defaults>
</compile_context>

<pallas_src>
import functools
import math

import jax
import jax.numpy as jnp
from jax import lax
from jax.experimental import pallas as pl
from jax.experimental.pallas import tpu as pltpu


def _round_up(v, m):
    return (v + m - 1) // m * m


def _arcface_kernel(x_ref, w_ref, y_ref, o_ref, *,
                    cos_m, sin_m, s, min_cos, max_cos, block_c, mxu_dtype):
    c_idx = pl.program_id(0)                       # class-tile index (outer grid axis)

    x = x_ref[...].astype(jnp.float32)             # (TB, F)
    w = w_ref[...].astype(jnp.float32)             # (TC, F)  (may arrive as bf16)
    y = y_ref[...]                                 # (TB, 1) int32 labels

    # F.normalize(dim=1): row / max(||row||, 1e-12)  ==  row * rsqrt(max(||row||^2, 1e-24))
    xn = x * lax.rsqrt(jnp.maximum(jnp.sum(x * x, axis=-1, keepdims=True), 1e-24))
    wn = w * lax.rsqrt(jnp.maximum(jnp.sum(w * w, axis=-1, keepdims=True), 1e-24))

    # cos_theta_j = xn @ wn^T without materializing the transpose; bf16 MXU
    # operands with f32 accumulation on the fast path.
    cos = lax.dot_general(
        xn.astype(mxu_dtype), wn.astype(mxu_dtype),
        dimension_numbers=(((1,), (1,)), ((), ())),
        preferred_element_type=jnp.float32)        # (TB, TC)

    tb, tc = cos.shape
    # Globally offset class ids for this tile; one-hot is zero everywhere the
    # label is not owned by this tile, so the margin correction needs no
    # cross-tile communication.
    class_ids = c_idx * block_c + lax.broadcasted_iota(jnp.int32, (tb, tc), dimension=1)
    one_hot = (class_ids == y).astype(jnp.float32)

    # gather cos at the target class (row-wise masked sum), clamp like the ref
    cos_yi = jnp.sum(one_hot * cos, axis=-1, keepdims=True)          # (TB, 1)
    cos_yi = jnp.clip(cos_yi, min_cos, max_cos)

    # cos(theta + m) = cos*cos(m) - sin(theta)*sin(m), sin(theta) = sqrt(1 - cos^2)
    sin_yi = jnp.sqrt(jnp.maximum(1.0 - cos_yi * cos_yi, 0.0))
    cos_yi_margin = cos_yi * cos_m - sin_yi * sin_m

    out = cos + one_hot * (cos_yi_margin - cos_yi)
    o_ref[...] = (s * out).astype(o_ref.dtype)


def arc_linear_forward(x, W, y, *, margin, s,
                       block_b=128, block_c=256, mxu_dtype=jnp.bfloat16):
    """ArcFace forward.  x: (B, nfeat) f32, W: (nclass, nfeat) f32, y: (B,) int."""
    eps = 0.0001
    assert block_b % 8 == 0 and block_c % 128 == 0
    B, F = x.shape
    C, Fw = W.shape
    assert Fw == F

    # --- padding for lane-dense, evenly-divisible tiles -----------------------
    Fp = _round_up(max(F, 128), 128)
    TB = min(block_b, _round_up(B, 8))
    TC = min(block_c, _round_up(C, 128))
    Bp = _round_up(B, TB)
    Cp = _round_up(C, TC)

    xp = jnp.pad(x.astype(jnp.float32), ((0, Bp - B), (0, Fp - F)))
    Wp = jnp.pad(W.astype(jnp.float32), ((0, Cp - C), (0, Fp - F)))
    if jnp.dtype(mxu_dtype) != jnp.dtype(jnp.float32):
        Wp = Wp.astype(mxu_dtype)                      # halve W HBM traffic (v5e win)
    yp = jnp.pad(y.astype(jnp.int32).reshape(-1, 1),
                 ((0, Bp - B), (0, 0)), constant_values=-1)

    grid = (Cp // TC, Bp // TB)                        # class OUTER, batch INNER

    kernel = functools.partial(
        _arcface_kernel,
        cos_m=math.cos(float(margin)),
        sin_m=math.sin(float(margin)),
        s=float(s),
        min_cos=eps - 1.0,
        max_cos=1.0 - eps,
        block_c=TC,
        mxu_dtype=mxu_dtype,
    )

    # VMEM budget: double-buffered x/W/y/out blocks + headroom for in-kernel
    # temporaries (xn, wn, cos, one_hot).  Clamp so it is valid on v7x (64 MiB).
    w_item = jnp.dtype(Wp.dtype).itemsize
    per_step = TB * Fp * 4 + TC * Fp * w_item + TB * TC * 4 + TB * 4
    vmem_bytes = 2 * per_step + 4 * (TB * Fp + TC * Fp + 3 * TB * TC) + (4 << 20)
    vmem_bytes = int(min(max(vmem_bytes, 16 * 1024 * 1024), 48 * 1024 * 1024))

    out = pl.pallas_call(
        kernel,
        out_shape=jax.ShapeDtypeStruct((Bp, Cp), jnp.float32),
        grid_spec=pltpu.PrefetchScalarGridSpec(
            num_scalar_prefetch=0,
            grid=grid,
            in_specs=[
                pl.BlockSpec((TB, Fp), lambda c, b: (b, 0)),   # x: batch-indexed
                pl.BlockSpec((TC, Fp), lambda c, b: (c, 0)),   # W: class-indexed (resident over inner loop)
                pl.BlockSpec((TB, 1), lambda c, b: (b, 0)),    # labels
            ],
            out_specs=pl.BlockSpec((TB, TC), lambda c, b: (b, c)),
        ),
        compiler_params=pltpu.CompilerParams(
            dimension_semantics=("parallel", "parallel"),
            vmem_limit_bytes=vmem_bytes,
        ),
    )(xp, Wp, yp)

    return out[:B, :C]


def _xavier_uniform(key, shape, dtype=jnp.float32):
    # nn.init.xavier_uniform_ for a (fan_out, fan_in) weight
    fan_out, fan_in = shape
    limit = (6.0 / (fan_in + fan_out)) ** 0.5
    return jax.random.uniform(key, shape, dtype, minval=-limit, maxval=limit)


def _reference(x, W, y, margin, s):
    xn = x / jnp.maximum(jnp.linalg.norm(x, axis=-1, keepdims=True), 1e-12)
    wn = W / jnp.maximum(jnp.linalg.norm(W, axis=-1, keepdims=True), 1e-12)
    cos = jnp.matmul(xn, wn.T, precision=lax.Precision.HIGHEST)
    cos_yi = jnp.clip(jnp.take_along_axis(cos, y[:, None], axis=1),
                      0.0001 - 1.0, 1.0 - 0.0001)
    cos_m = jnp.cos(jnp.arccos(cos_yi) + margin)
    oh = jax.nn.one_hot(y, W.shape[0], dtype=jnp.float32)
    return s * (cos + oh * (cos_m - cos_yi))


if __name__ == "__main__":
    margin, s = 0.5, 30.0
    key = jax.random.PRNGKey(0)

    # ---- Case 1: aligned shapes, multi-tile grid (3 class tiles x 3 batch tiles),
    #              exact f32 MXU path, strict check.
    B, F, C = 48, 128, 384
    k1, k2, k3 = jax.random.split(key, 3)
    x = jax.random.normal(k1, (B, F), dtype=jnp.float32)
    W = _xavier_uniform(k2, (C, F))
    y = jax.random.randint(k3, (B,), 0, C, dtype=jnp.int32)
    ref = _reference(x, W, y, margin, s)

    out_f32 = arc_linear_forward(x, W, y, margin=margin, s=s,
                                 block_b=16, block_c=128, mxu_dtype=jnp.float32)
    jax.block_until_ready(out_f32)
    err = float(jnp.max(jnp.abs(out_f32 - ref)))
    assert jnp.allclose(out_f32, ref, atol=2e-3, rtol=1e-3), f"f32 path max err {err}"

    # ---- Case 2: default bf16-operand MXU path (v6e/v7x fast path), loose check.
    out_bf16 = arc_linear_forward(x, W, y, margin=margin, s=s,
                                  block_b=16, block_c=128)
    jax.block_until_ready(out_bf16)
    err_bf16 = float(jnp.max(jnp.abs(out_bf16 - ref)))
    assert jnp.allclose(out_bf16, ref, atol=0.5, rtol=0.0), f"bf16 path max err {err_bf16}"

    # ---- Case 3: unaligned shapes exercise the padding / slicing path.
    B2, F2, C2 = 10, 96, 200
    k4, k5, k6 = jax.random.split(jax.random.PRNGKey(1), 3)
    x2 = jax.random.normal(k4, (B2, F2), dtype=jnp.float32)
    W2 = _xavier_uniform(k5, (C2, F2))
    y2 = jax.random.randint(k6, (B2,), 0, C2, dtype=jnp.int32)
    ref2 = _reference(x2, W2, y2, margin, s)
    out2 = arc_linear_forward(x2, W2, y2, margin=margin, s=s, mxu_dtype=jnp.float32)
    jax.block_until_ready(out2)
    err2 = float(jnp.max(jnp.abs(out2 - ref2)))
    assert jnp.allclose(out2, ref2, atol=2e-3, rtol=1e-3), f"padded path max err {err2}"

    print("KERNEL_OK")
</pallas_src>

<mosaic_0001>
module attributes {stable_mosaic.version = 11 : i64} {
  func.func @_arcface_kernel(%arg0: i32, %arg1: i32, %arg2: memref<16x128xf32, #tpu.memory_space<vmem>>, %arg3: memref<128x128xf32, #tpu.memory_space<vmem>>, %arg4: memref<16x1xi32, #tpu.memory_space<vmem>>, %arg5: memref<16x128xf32, #tpu.memory_space<vmem>>) attributes {dimension_semantics = [#tpu.dimension_semantics<parallel>, #tpu.dimension_semantics<parallel>], iteration_bounds = array<i64: 3, 3>, scalar_prefetch = 0 : i64, scratch_operands = 0 : i64, tpu.core_type = #tpu.core_type<tc>, window_params = [{transform_indices = @transform_0, window_bounds = array<i64: 16, 128>}, {transform_indices = @transform_1, window_bounds = array<i64: 128, 128>}, {transform_indices = @transform_2, window_bounds = array<i64: 16, 1>}, {transform_indices = @transform_3, window_bounds = array<i64: 16, 128>}]} {
    %c0 = arith.constant 0 : index
    %c0_0 = arith.constant 0 : index
    %0 = vector.load %arg2[%c0, %c0_0] : memref<16x128xf32, #tpu.memory_space<vmem>>, vector<16x128xf32>
    %c0_1 = arith.constant 0 : index
    %c0_2 = arith.constant 0 : index
    %1 = vector.load %arg3[%c0_1, %c0_2] : memref<128x128xf32, #tpu.memory_space<vmem>>, vector<128x128xf32>
    %c0_3 = arith.constant 0 : index
    %c0_4 = arith.constant 0 : index
    %2 = vector.load %arg4[%c0_3, %c0_4] : memref<16x1xi32, #tpu.memory_space<vmem>>, vector<16x1xi32>
    %3 = arith.mulf %0, %0 : vector<16x128xf32>
    %cst = arith.constant dense<0.000000e+00> : vector<16xf32>
    %4 = vector.multi_reduction <add>, %3, %cst [1] : vector<16x128xf32> to vector<16xf32>
    %5 = vector.shape_cast %4 : vector<16xf32> to vector<16x1xf32>
    %cst_5 = arith.constant 1.000000e-24 : f32
    %6 = vector.broadcast %cst_5 : f32 to vector<16x1xf32>
    %7 = arith.maximumf %5, %6 : vector<16x1xf32>
    %8 = math.rsqrt %7 : vector<16x1xf32>
    %9 = vector.broadcast %8 : vector<16x1xf32> to vector<16x128xf32>
    %10 = arith.mulf %0, %9 : vector<16x128xf32>
    %11 = arith.mulf %1, %1 : vector<128x128xf32>
    %cst_6 = arith.constant dense<0.000000e+00> : vector<128xf32>
    %12 = vector.multi_reduction <add>, %11, %cst_6 [1] : vector<128x128xf32> to vector<128xf32>
    %13 = vector.shape_cast %12 : vector<128xf32> to vector<128x1xf32>
    %cst_7 = arith.constant 1.000000e-24 : f32
    %14 = vector.broadcast %cst_7 : f32 to vector<128x1xf32>
    %15 = arith.maximumf %13, %14 : vector<128x1xf32>
    %16 = math.rsqrt %15 : vector<128x1xf32>
    %17 = vector.broadcast %16 : vector<128x1xf32> to vector<128x128xf32>
    %18 = arith.mulf %1, %17 : vector<128x128xf32>
    %cst_8 = arith.constant dense<0.000000e+00> : vector<16x128xf32>
    %19 = tpu.matmul %10, %18, %cst_8 {dimension_numbers = #tpu.dot_dimension_numbers<[1], [1], [0], [0], [0, 0, 1, 0], [], []>} : vector<16x128xf32>, vector<128x128xf32>, vector<16x128xf32> -> vector<16x128xf32>
    %c128_i32 = arith.constant 128 : i32
    %20 = arith.muli %arg0, %c128_i32 : i32
    %21 = tpu.iota {dimensions = array<i32: 1>} : vector<16x128xi32>
    %22 = vector.broadcast %20 : i32 to vector<16x128xi32>
    %23 = arith.addi %22, %21 : vector<16x128xi32>
    %24 = vector.broadcast %2 : vector<16x1xi32> to vector<16x128xi32>
    %25 = arith.cmpi eq, %23, %24 : vector<16x128xi32>
    %26 = arith.extui %25 : vector<16x128xi1> to vector<16x128xi32>
    %27 = arith.sitofp %26 : vector<16x128xi32> to vector<16x128xf32>
    %28 = arith.mulf %27, %19 : vector<16x128xf32>
    %cst_9 = arith.constant dense<0.000000e+00> : vector<16xf32>
    %29 = vector.multi_reduction <add>, %28, %cst_9 [1] : vector<16x128xf32> to vector<16xf32>
    %30 = vector.shape_cast %29 : vector<16xf32> to vector<16x1xf32>
    %cst_10 = arith.constant -0.999899983 : f32
    %cst_11 = arith.constant 0.999899983 : f32
    %31 = vector.broadcast %cst_10 : f32 to vector<16x1xf32>
    %32 = arith.maximumf %31, %30 : vector<16x1xf32>
    %33 = vector.broadcast %cst_11 : f32 to vector<16x1xf32>
    %34 = arith.minimumf %33, %32 : vector<16x1xf32>
    %35 = arith.mulf %34, %34 : vector<16x1xf32>
    %cst_12 = arith.constant 1.000000e+00 : f32
    %36 = vector.broadcast %cst_12 : f32 to vector<16x1xf32>
    %37 = arith.subf %36, %35 : vector<16x1xf32>
    %cst_13 = arith.constant 0.000000e+00 : f32
    %38 = vector.broadcast %cst_13 : f32 to vector<16x1xf32>
    %39 = arith.maximumf %37, %38 : vector<16x1xf32>
    %40 = math.sqrt %39 : vector<16x1xf32>
    %cst_14 = arith.constant 0.87758255 : f32
    %41 = vector.broadcast %cst_14 : f32 to vector<16x1xf32>
    %42 = arith.mulf %34, %41 : vector<16x1xf32>
    %cst_15 = arith.constant 0.47942555 : f32
    %43 = vector.broadcast %cst_15 : f32 to vector<16x1xf32>
    %44 = arith.mulf %40, %43 : vector<16x1xf32>
    %45 = arith.subf %42, %44 : vector<16x1xf32>
    %46 = arith.subf %45, %34 : vector<16x1xf32>
    %47 = vector.broadcast %46 : vector<16x1xf32> to vector<16x128xf32>
    %48 = arith.mulf %27, %47 : vector<16x128xf32>
    %49 = arith.addf %19, %48 : vector<16x128xf32>
    %cst_16 = arith.constant 3.000000e+01 : f32
    %50 = vector.broadcast %cst_16 : f32 to vector<16x128xf32>
    %51 = arith.mulf %50, %49 : vector<16x128xf32>
    %c0_17 = arith.constant 0 : index
    %c0_18 = arith.constant 0 : index
    %52 = vector.load %arg5[%c0_17, %c0_18] : memref<16x128xf32, #tpu.memory_space<vmem>>, vector<16x128xf32>
    tpu.vector_store %arg5[%c0_17, %c0_18], %51 {strides = array<i32>} : memref<16x128xf32, #tpu.memory_space<vmem>>, vector<16x128xf32>,
    return
  }
  func.func @transform_0(%arg0: i32, %arg1: i32) -> (i32, i32) {
    %c0_i32 = arith.constant 0 : i32
    %c0_i32_0 = arith.constant 0 : i32
    return %arg1, %c0_i32 : i32, i32
  }
  func.func @transform_1(%arg0: i32, %arg1: i32) -> (i32, i32) {
    %c0_i32 = arith.constant 0 : i32
    %c0_i32_0 = arith.constant 0 : i32
    return %arg0, %c0_i32 : i32, i32
  }
  func.func @transform_2(%arg0: i32, %arg1: i32) -> (i32, i32) {
    %c0_i32 = arith.constant 0 : i32
    %c0_i32_0 = arith.constant 0 : i32
    return %arg1, %c0_i32 : i32, i32
  }
  func.func @transform_3(%arg0: i32, %arg1: i32) -> (i32, i32) {
    %c0_i32 = arith.constant 0 : i32
    return %arg1, %arg0 : i32, i32
  }
}

</mosaic_0001>

<bundles_post_ra>
// kernel: tpu_custom_call.1
= control target key start
LH: loop header
LB: loop body
LE: loop exit
PB: predicated region body
PF: predicated region fallthrough
CT: control target
= control target key end

     0   :  { %8 = vsyncpa [#allocation3], 0  ;;  %s1723_s0 = inlined_call_operand.vmem [shape: f32[48,128], index: 0, kind: input, shape index: {}]   ;;  %s1724_s1 = inlined_call_operand.hbm [shape: f32[384,128], index: 1, kind: input, shape index: {}]   ;;  %s1725_s2 = inlined_call_operand.vmem [shape: s32[48,1], index: 2, kind: input, shape index: {}]   ;;  %s1726_s3 = inlined_call_operand.hbm [shape: f32[48,384], index: 3, kind: output, shape index: {}]  }
   0x1   :  { %10 = vsyncpa [#allocation3 + $0x1], 0 }
   0x2   :  { %11 = vsyncpa [#allocation4], 0 }
   0x3   :  { %13 = vsyncpa [#allocation4 + $0x1], 0  ;;  %s1140_s12 = smov 0   ;;  %s1142_s13 = smov 0  }
   0x4   :  { %s1144_s14 = smov 0   ;;  %s1146_s15 = smov 0  }
   0x5   :  { %s1148_s16 = smov 0   ;;  %s1150_s17 = smov 0  }
   0x6   :  { %s1152_s18 = smov 0   ;;  %s1154_s19 = smov 0  }
   0x7   :  { %s1156_s20 = smov 0   ;;  %s1158_s21 = smov 0  }
   0x8   :  { %s1160_s22 = smov 0  }
   0x9 LB: > { %1731 = sst [smem:[#allocation8_spill]] %s1103_s20  ;;  %s765_s23 = sadd.s32 4294967295, %s1111_s22   ;;  %s1111_s22 = sphi %s1160_s22, %s19_s22   ;;  %s1107_s21 = sphi %s1158_s21, %s1764_s21   ;;  %s1103_s20 = sphi %s1156_s20, %s1763_s20   ;;  %s1099_s19 = sphi %s1154_s19, %s1762_s19   ;;  %s1095_s18 = sphi %s1152_s18, %s1761_s18   ;;  %s1091_s17 = sphi %s1150_s17, %s1770_s17   ;;  %s1087_s16 = sphi %s1148_s16, %s1769_s16   ;;  %s1083_s15 = sphi %s1146_s15, %s1768_s15   ;;  %s1079_s14 = sphi %s1144_s14, %s1767_s14   ;;  %s1075_s13 = sphi %s1142_s13, %s1766_s13   ;;  %s1071_s12 = sphi %s1140_s12, %s1765_s12  }
   0xa   : > { %1732 = sst [smem:[#allocation9_spill]] %s1107_s21  ;;  %s766_s24 = sadd.s32 4294967294, %s1111_s22  }
   0xb   : > { %s28_s25 = sadd.s32 1, %s1103_s20  ;;  %s31_s26 = sadd.s32 1, %s1107_s21 }
   0xc   : > { %p29_p0 = scmp.ge.s32.totalorder %s28_s25, 3  ;;  %s64_s27 = sadd.s32 1, %s1091_s17 }
   0xd   : > { %p71_p1 = scmp.ne.s32.totalorder %s1091_s17, %s1087_s16  ;;  %p72_p2 = scmp.eq.s32.totalorder %s1111_s22, 0 }
   0xe   : > { %s1772_s25 = smov (%p29_p0, %s28_s25), 0  ;;  %s1774_s26 = smov (!%p29_p0, %s31_s26), %s1107_s21 }
   0xf   : > { %1733 = sst [smem:[#allocation10_spill]] %s1772_s25  ;;  %p1204_p3 = por %p72_p2, %p71_p1 }
  0x10   : > { %p77_p4 = scmp.ne.s32.totalorder %s1087_s16, %s1083_s15  ;;  %p33_p5 = scmp.ge.s32.totalorder %s1774_s26, 3 }
  0x11   : > { %p78_p6 = scmp.eq.s32.totalorder %s765_s23, 0  ;;  %s113_s29 = ssub.s32 %s1103_s20, %s1772_s25 }
  0x12   : > { %s118_s30 = sadd.s32 1, %s1079_s14  ;;  %s1776_s26 = smov (%p33_p5, %s1774_s26), 0 }
  0x13   : > { %1735 = sst [smem:[#allocation11_spill]] %s1776_s26  ;;  %p1214_p7 = por %p78_p6, %p77_p4 }
  0x14   : > { %p128_p8 = scmp.ne.s32.totalorder %s1079_s14, %s1075_s13  ;;  %s61_s5 = ssub.s32 %s1107_s21, %s1776_s26 }
  0x15   : > { %p129_p9 = scmp.eq.s32.totalorder %s765_s23, 8  ;;  %p62_p10 = scmp.eq.s32.totalorder %s61_s5, 0 }
  0x16   : > { %s115_s6 = sor.u32 %s113_s29, %s61_s5  ;;  %p134_p13 = scmp.ne.s32.totalorder %s1075_s13, %s1071_s12 }
  0x17   : > { %p116_p11 = scmp.eq.s32.totalorder %s115_s6, 0  ;;  %p1222_p12 = por %p129_p9, %p128_p8 }
  0x18   : > { %s1227_s8 = scalar_select %p62_p10, %s1091_s17, %s64_s27  }
  0x19   : > { %s1230_s9 = scalar_select %p116_p11, %s1079_s14, %s118_s30  }
  0x1a   : > { %p135_p0 = scmp.eq.s32.totalorder %s766_s24, 8  ;;  %p820_p1 = scmp.lt.s32.totalorder %s1111_s22, 9 }
  0x1b   : > { %s164_s11 = sand.u32 1, %s1091_s17   ;;  %s790_s23 = sshll.u32 %s1107_s21, 7 }
  0x1c   : > { %p1235_p2 = por %p135_p0, %p134_p13  ;;  %s769_s15 = sshll.u32 %s164_s11, 7 }
  0x1d   : > { %s173_s6 = scalar_lea.hbm %s1724_s1, %s790_s23  ;;  %s168_s27 = scalar_lea.vmem [#allocation2], %s769_s15 }
  0x1e   : > { %s176_s26 = sshll.u32 %s168_s27, 4  ;;  %s174_s25 = sshll.u32 %s173_s6, 4  ;;  %s177_s26 = int_to_ptr.vmem [resolvable:$true] %s176_s26  ;;  %s175_s25 = int_to_ptr.hbm [resolvable:$true] %s174_s25 }
  0x1f   : > { %p813_p4 = pnand %p820_p1, %p1204_p3  ;;  %p772_p5 = scmp.ge.s32.totalorder %s1111_s22, 1 }
  0x20   : > { %s165_s24 = scalar_lea.sflag [#allocation3], %s164_s11  ;;  %s1113_s30 = smov 128  }
  0x21   : > { %s1114_s20 = smov 8   ;;  %p193_p6 = scmp.lt.s32.totalorder %s1111_s22, 10 }
  0x22   : > { %815 = dma.hbm_to_vmem [thread:$0]  (!%p813_p4), %s175_s25, 2048, %s177_s26, %s165_s24, %s1113_s30, %s1113_s30, %s1114_s20  }
  0x23   : > { %p194_p8 = pnand %p772_p5, %p193_p6 }
  0x24   : > { %s199_s21 = sand.u32 (!%p194_p8), 1, %s1087_s16  }
  0x25   : > { %197 = sbr.rel (%p194_p8) target bundleno = 549 (0x225), region = 32  ;;  %s773_s29 = sshll.u32 (!%p194_p8), %s199_s21, 7 }
  0x26   : > { %s200_s23 = scalar_lea.sflag (!%p194_p8), [#allocation3], %s199_s21  ;;  %s1249_s15 = scalar_lea.vmem (!%p194_p8), [#allocation2], %s773_s29 }
  0x2a   : > { %1062 = dma.done.wait (%p1214_p7), %s200_s23, 2048  }
  0x2b   : > { %1064 = vsyncadd (%p1214_p7), %s200_s23, 4294965248  ;;  %v1256_v0 = vld [vmem:[%s1249_s15 + $0x78] sm:$0xff]  ;;  %v1259_v1 = vld [vmem:[%s1249_s15 + $0x68] sm:$0xff]  ;;  %s775_s20 = sshll.u32 %s1095_s18, 1  ;;  %s779_s6 = sshll.u32 %s1099_s19, 7 }
  0x2c   : > { %v1262_v2 = vld [vmem:[%s1249_s15 + $0x58] sm:$0xff]  ;;  %v316_v3 = vmul.f32 %v1256_v0, %v1256_v0  ;;  %v314_v4 = vmul.f32 %v1259_v1, %v1259_v1  ;;  %v1271_v6 = vld [vmem:[%s1249_s15 + $0x70] sm:$0xff]  ;;  %v1274_v7 = vld [vmem:[%s1249_s15 + $0x60] sm:$0xff]  ;;  %p238_p3 = scmp.lt.s32.totalorder %s775_s20, 5  ;;  %s234_s27 = sand.u32 1, %s1075_s13  }
  0x2d   : > { %v312_v5 = vmul.f32 %v1262_v2, %v1262_v2  ;;  %v1277_v8 = vld [vmem:[%s1249_s15 + $0x50] sm:$0xff]  ;;  %v315_v9 = vmul.f32 %v1271_v6, %v1271_v6  ;;  %v313_v10 = vmul.f32 %v1274_v7, %v1274_v7  ;;  %v1286_v12 = vld [vmem:[%s1249_s15 + $0x48] sm:$0xff]  ;;  %v1289_v13 = vld [vmem:[%s1249_s15 + $0x40] sm:$0xff]  ;;  %s807_s24 = smul.u32 6, %s1095_s18  ;;  %s774_s30 = sshll.u32 %s234_s27, 4 }
  0x2e   : > { %347 = vadd.xlane.f32.xlu0 %v316_v3  ;;  %343 = vadd.xlane.f32.xlu1 %v314_v4  ;;  %v311_v11 = vmul.f32 %v1277_v8, %v1277_v8  ;;  %v1292_v14 = vld [vmem:[%s1249_s15 + $0x38] sm:$0xff]  ;;  %v310_v15 = vmul.f32 %v1286_v12, %v1286_v12  ;;  %v309_v16 = vmul.f32 %v1289_v13, %v1289_v13  ;;  %v1302_v18 = vld [vmem:[%s1249_s15 + $0x30] sm:$0xff]  ;;  %v1305_v19 = vld [vmem:[%s1249_s15 + $0x28] sm:$0xff]  ;;  %s1778_s20 = smov (!%p238_p3, %s775_s20), 5 }
  0x2f   : > { %339 = vadd.xlane.f32.xlu2 %v312_v5  ;;  %v308_v17 = vmul.f32 %v1292_v14, %v1292_v14  ;;  %v1308_v20 = vld [vmem:[%s1249_s15 + $0x20] sm:$0xff]  ;;  %v307_v21 = vmul.f32 %v1302_v18, %v1302_v18  ;;  %v306_v22 = vmul.f32 %v1305_v19, %v1305_v19  ;;  %v1319_v24 = vld [vmem:[%s1249_s15 + $0x18] sm:$0xff]  ;;  %v1322_v25 = vld [vmem:[%s1249_s15 + $0x10] sm:$0xff]  ;;  %s776_s21 = sshll.u32 %s1778_s20, 3  ;;  %s649_s29 = sadd.s32 %s1099_s19, %s807_s24 }
  0x30   : > { %v305_v23 = vmul.f32 %v1308_v20, %v1308_v20  ;;  %v1325_v26 = vld [vmem:[%s1249_s15 + $0x8] sm:$0xff]  ;;  %v304_v27 = vmul.f32 %v1319_v24, %v1319_v24  ;;  %v303_v28 = vmul.f32 %v1322_v25, %v1322_v25  ;;  %s241_s28 = scalar_lea.vmem %s1723_s0, %s776_s21  ;;  %v1340_v30 = vld [vmem:[%s1249_s15] sm:$0xff]  ;;  %s248_s5 = scalar_lea.vmem %s1725_s2, %s776_s21 }
  0x31   : > { %v302_v29 = vmul.f32 %v1325_v26, %v1325_v26  ;;  %v1342_v31 = vld [vmem:[%s241_s28] sm:$0xff]  ;;  %v1344_v32 = vld [vmem:[%s241_s28 + $0x8] sm:$0xff]  ;;  %v301_v33 = vmul.f32 %v1340_v30, %v1340_v30  ;;  %s787_s23 = sshll.u32 %s649_s29, 3  ;;  %s236_s15 = scalar_lea.vmem [#allocation5], %s774_s30 }
  0x32   : > { %v271_v34 = vmul.f32 %v1342_v31, %v1342_v31  ;;  %v272_v35 = vmul.f32 %v1344_v32, %v1344_v32  ;;  %s651_s21 = scalar_lea.hbm %s1726_s3, %s787_s23  ;;  %s652_s25 = sshll.u32 %s236_s15, 4  ;;  %s653_s25 = int_to_ptr.vmem [resolvable:$true] %s652_s25 }
  0x33   : > { %s654_s26 = sshll.u32 %s651_s21, 4  ;;  %s638_s19 = scalar_lea.sflag [#allocation4], %s234_s27  ;;  %s655_s26 = int_to_ptr.hbm [resolvable:$true] %s654_s26 }
  0x34   : > { %s1003_s28 = sshra.s32 %s655_s26, 4  ;;  %s1004_s28 = int_to_ptr.hbm [resolvable:$true] %s1003_s28 }
  0x35   : > { %s1005_s4 = scalar_lea.hbm %s1004_s28, 16  ;;  %p1010_p11 = scmp.lt.s32.totalorder %s1004_s28, %s1726_s3 }
  0x36   : > { %345 = vadd.xlane.f32.xlu0 %v315_v9  ;;  %341 = vadd.xlane.f32.xlu1 %v313_v10  ;;  %p1006_p7 = scmp.ne.s32.totalorder %s1004_s28, %s1005_s4 }
  0x37   : > { %337 = vadd.xlane.f32.xlu2 %v311_v11 }
  0x38   : > { %p1007_p9 = pnand %p1006_p7, %p1222_p12 }
  0x3a   : > { %p1008_p10 = pneg %p1007_p9 }
  0x3e   : > { %335 = vadd.xlane.f32.xlu0 %v310_v15  ;;  %333 = vadd.xlane.f32.xlu1 %v309_v16 }
  0x3f   : > { %331 = vadd.xlane.f32.xlu2 %v308_v17 }
  0x46   : > { %329 = vadd.xlane.f32.xlu0 %v307_v21  ;;  %327 = vadd.xlane.f32.xlu1 %v306_v22 }
  0x47   : > { %325 = vadd.xlane.f32.xlu2 %v305_v23 }
  0x4e   : > { %323 = vadd.xlane.f32.xlu0 %v304_v27  ;;  %321 = vadd.xlane.f32.xlu1 %v303_v28 }
  0x4f   : > { %319 = vadd.xlane.f32.xlu2 %v302_v29 }
  0x56   : > { %317 = vadd.xlane.f32.xlu0 %v301_v33  ;;  %273 = vadd.xlane.f32.xlu1 %v271_v34 }
  0x57   : > { %275 = vadd.xlane.f32.xlu2 %v272_v35 }
  0xa1   : > { %v348_v36 = vpop.xlane.xlu0 %347  ;;  %v344_v37 = vpop.xlane.xlu1 %343 }
  0xa2   : > { %v364_v38 = vmax.f32 %v348_v36, 1e-24  ;;  %v1352_v39 = vmax.f32 %v344_v37, 1e-24  ;;  %v340_v40 = vpop.xlane.xlu2 %339 }
  0xa3   : > { %v1354_v41 = vmax.f32 %v340_v40, 1e-24 }
  0xa4   : > { %919 = vrsqrt.f32 %v364_v38  ;;  %vm521_vm1 = vweird.f32 %v364_v38  ;;  %vm501_vm3 = vweird.f32 %v1352_v39 }
  0xa5   : > { %921 = vrsqrt.f32 %v1352_v39  ;;  %vm481_vm11 = vweird.f32 %v1354_v41 }
  0xa6   : > { %923 = vrsqrt.f32 %v1354_v41 }
  0xa9   : > { %v346_v42 = vpop.xlane.xlu0 %345  ;;  %v342_v43 = vpop.xlane.xlu1 %341 }
  0xaa   : > { %v920_v44 = vpop.eup %919  ;;  %v363_v45 = vmax.f32 %v346_v42, 1e-24  ;;  %v1358_v46 = vmax.f32 %v342_v43, 1e-24  ;;  %v338_v47 = vpop.xlane.xlu2 %337 }
  0xab   : > { %v1360_v48 = vpop.eup %921  ;;  %v516_v49 = vmul.f32 %v920_v44, %v364_v38  ;;  %v1362_v50 = vmax.f32 %v338_v47, 1e-24  ;;  %vm522_vm0 = vweird.f32 %v920_v44 }
  0xac   : > { %v496_v51 = vmul.f32 %v1360_v48, %v1352_v39  ;;  %925 = vrsqrt.f32 %v363_v45  ;;  %v1367_v53 = vpop.eup %923  ;;  %vm523_vm2 = vmor %vm521_vm1, %vm522_vm0  ;;  %vm511_vm5 = vweird.f32 %v363_v45  ;;  %vm502_vm6 = vweird.f32 %v1360_v48 }
  0xad   : > { %v517_v52 = vmul.f32 %v920_v44, %v516_v49  ;;  %927 = vrsqrt.f32 %v1358_v46  ;;  %v476_v57 = vmul.f32 %v1367_v53, %v1354_v41  ;;  %vm491_vm8 = vweird.f32 %v1358_v46  ;;  %vm503_vm10 = vmor %vm501_vm3, %vm502_vm6 }
  0xae   : > { %929 = vrsqrt.f32 %v1362_v50  ;;  %v497_v55 = vmul.f32 %v1360_v48, %v496_v51  ;;  %vm482_vm12 = vweird.f32 %v1367_v53  ;;  %vm471_vm15 = vweird.f32 %v1362_v50 }
  0xaf   : > { %v518_v54 = vmul.f32 0.5, %v517_v52  ;;  %v477_v16 = vmul.f32 %v1367_v53, %v476_v57  ;;  %vm1445_vm14 = vmor %vm481_vm11, %vm482_vm12 }
  0xb0   : > { %v498_v4 = vmul.f32 0.5, %v497_v55 }
  0xb1   : > { %v519_v56 = vsub.f32 1.5, %v518_v54  ;;  %v336_v58 = vpop.xlane.xlu0 %335  ;;  %v334_v59 = vpop.xlane.xlu1 %333  ;;  %v478_v34 = vmul.f32 0.5, %v477_v16 }
  0xb2   : > { %v926_v60 = vpop.eup %925  ;;  %v1373_v61 = vmax.f32 %v336_v58, 1e-24  ;;  %v1375_v62 = vmax.f32 %v334_v59, 1e-24  ;;  %v332_v63 = vpop.xlane.xlu2 %331  ;;  %v499_v27 = vsub.f32 1.5, %v498_v4 }
  0xb3   : > { %v1377_v3 = vpop.eup %927  ;;  %v506_v5 = vmul.f32 %v926_v60, %v363_v45  ;;  %v520_v9 = vmul.f32 %v920_v44, %v519_v56  ;;  %v1384_v15 = vmax.f32 %v332_v63, 1e-24  ;;  %vm512_vm4 = vweird.f32 %v926_v60 }
  0xb4   : > { %v1379_v10 = vpop.eup %929  ;;  %v486_v11 = vmul.f32 %v1377_v3, %v1358_v46  ;;  %931 = vrsqrt.f32 %v1373_v61  ;;  %v500_v49 = vmul.f32 %v1360_v48, %v499_v27  ;;  %vm513_vm7 = vmor %vm511_vm5, %vm512_vm4  ;;  %v479_v51 = vsub.f32 1.5, %v478_v34 }
  0xb5   : > { %v507_v17 = vmul.f32 %v926_v60, %v506_v5  ;;  %933 = vrsqrt.f32 %v1375_v62  ;;  %v466_v22 = vmul.f32 %v1379_v10, %v1362_v50  ;;  %v524_v23 = vsel %vm523_vm2, %v920_v44, %v520_v9 }
  0xb6   : > { %v487_v21 = vmul.f32 %v1377_v3, %v486_v11  ;;  %v540_v29 = vmul.f32 %v524_v23, %v1256_v0  ;;  %935 = vrsqrt.f32 %v1384_v15  ;;  %vm492_vm9 = vweird.f32 %v1377_v3 }
  0xb7   : > { %v508_v28 = vmul.f32 0.5, %v507_v17  ;;  %v467_v38 = vmul.f32 %v1379_v10, %v466_v22  ;;  %vm1435_vm13 = vmor %vm491_vm8, %vm492_vm9  ;;  %v480_v9 = vmul.f32 %v1367_v53, %v479_v51  ;;  %vm472_vm0 = vweird.f32 %v1379_v10 }
  0xb8   : > { %v488_v33 = vmul.f32 0.5, %v487_v21  ;;  %541 = vmatpush.xpose.msra.mxu0 %v540_v29  ;;  %791 = vmatpush.xpose.msra.mxu1 %v540_v29  ;;  %vm1468_vm1 = vmor %vm471_vm15, %vm472_vm0  ;;  %vm461_vm2 = vweird.f32 %v1373_v61  ;;  %vm451_vm4 = vweird.f32 %v1375_v62  ;;  %vm441_vm8 = vweird.f32 %v1384_v15 }
  0xb9   : > { %v509_v35 = vsub.f32 1.5, %v508_v28  ;;  %v330_v36 = vpop.xlane.xlu0 %329  ;;  %v328_v44 = vpop.xlane.xlu1 %327  ;;  %v468_v58 = vmul.f32 0.5, %v467_v38  ;;  %v484_v28 = vsel %vm1445_vm14, %v1367_v53, %v480_v9 }
  0xba   : > { %v1394_v37 = vpop.eup %931  ;;  %v1397_v40 = vmax.f32 %v330_v36, 1e-24  ;;  %v489_v42 = vsub.f32 1.5, %v488_v33  ;;  %v1412_v55 = vmax.f32 %v328_v44, 1e-24  ;;  %v326_v57 = vpop.xlane.xlu2 %325  ;;  %v536_v53 = vmul.f32 %v484_v28, %v1262_v2 }
  0xbb   : > { %v1400_v0 = vpop.eup %933  ;;  %v456_v43 = vmul.f32 %v1394_v37, %v1373_v61  ;;  %v510_v47 = vmul.f32 %v926_v60, %v509_v35  ;;  %v1426_v4 = vmax.f32 %v326_v57, 1e-24  ;;  %v469_v11 = vsub.f32 1.5, %v468_v58 }
  0xbc   : > { %v1407_v52 = vpop.eup %935  ;;  %v446_v54 = vmul.f32 %v1400_v0, %v1375_v62  ;;  %937 = vrsqrt.f32 %v1397_v40  ;;  %v490_v63 = vmul.f32 %v1377_v3, %v489_v42  ;;  %vm462_vm3 = vweird.f32 %v1394_v37 }
  0xbd   : > { %v514_v45 = vsel %vm513_vm7, %v926_v60, %v510_v47  ;;  %v457_v59 = vmul.f32 %v1394_v37, %v456_v43  ;;  %v504_v60 = vsel %vm503_vm10, %v1360_v48, %v500_v49  ;;  %939 = vrsqrt.f32 %v1412_v55  ;;  %vm1499_vm6 = vmor %vm461_vm2, %vm462_vm3 }
  0xbe   : > { %v539_v56 = vmul.f32 %v514_v45, %v1271_v6  ;;  %v436_v6 = vmul.f32 %v1407_v52, %v1384_v15  ;;  %v447_v39 = vmul.f32 %v1400_v0, %v446_v54  ;;  %v538_v5 = vmul.f32 %v504_v60, %v1259_v1 }
  0xbf   : > { %v458_v16 = vmul.f32 0.5, %v457_v59  ;;  %v494_v21 = vsel %vm1435_vm13, %v1377_v3, %v490_v63  ;;  %941 = vrsqrt.f32 %v1426_v4  ;;  %v470_v34 = vmul.f32 %v1379_v10, %v469_v11 }
  0xc0   : > { %542 = vmatpush.xpose.msra.mxu0 %v539_v56  ;;  %792 = vmatpush.xpose.msra.mxu1 %v539_v56  ;;  %v437_v22 = vmul.f32 %v1407_v52, %v436_v6  ;;  %v448_v23 = vmul.f32 0.5, %v447_v39  ;;  %v537_v41 = vmul.f32 %v494_v21, %v1274_v7  ;;  %vm452_vm5 = vweird.f32 %v1400_v0 }
  0xc1   : > { %v324_v17 = vpop.xlane.xlu0 %323  ;;  %v322_v27 = vpop.xlane.xlu1 %321  ;;  %v459_v29 = vsub.f32 1.5, %v458_v16  ;;  %v474_v49 = vsel %vm1468_vm1, %v1379_v10, %v470_v34  ;;  %vm1512_vm7 = vmor %vm451_vm4, %vm452_vm5  ;;  %vm442_vm9 = vweird.f32 %v1407_v52  ;;  %vm431_vm11 = vweird.f32 %v1397_v40 }
  0xc2   : > { %v1449_v46 = vpop.eup %937  ;;  %v1455_v3 = vmax.f32 %v324_v17, 1e-24  ;;  %v1473_v7 = vmax.f32 %v322_v27, 1e-24  ;;  %v449_v38 = vsub.f32 1.5, %v448_v23  ;;  %v438_v42 = vmul.f32 0.5, %v437_v22  ;;  %v320_v43 = vpop.xlane.xlu2 %319  ;;  %vm1535_vm10 = vmor %vm441_vm8, %vm442_vm9 }
  0xc3   : > { %v426_v33 = vmul.f32 %v1449_v46, %v1397_v40  ;;  %v1464_v35 = vpop.eup %939  ;;  %v460_v2 = vmul.f32 %v1394_v37, %v459_v29  ;;  %v1489_v51 = vmax.f32 %v320_v43, 1e-24  ;;  %v535_v56 = vmul.f32 %v474_v49, %v1277_v8  ;;  %v269_v43 = vld [vmem:[%s248_s5] sm:$0xff] }
  0xc4   : > { %543 = vmatpush.xpose.msra.mxu0 %v538_v5  ;;  %793 = vmatpush.xpose.msra.mxu1 %v538_v5  ;;  %943 = vrsqrt.f32 %v1455_v3  ;;  %v416_v47 = vmul.f32 %v1464_v35, %v1412_v55  ;;  %v439_v45 = vsub.f32 1.5, %v438_v42  ;;  %v450_v63 = vmul.f32 %v1400_v0, %v449_v38 }
  0xc5   : > { %v1478_v44 = vpop.eup %941  ;;  %v427_v50 = vmul.f32 %v1449_v46, %v426_v33  ;;  %945 = vrsqrt.f32 %v1473_v7  ;;  %v464_v60 = vsel %vm1499_vm6, %v1394_v37, %v460_v2  ;;  %vm432_vm12 = vweird.f32 %v1449_v46 }
  0xc6   : > { %v406_v54 = vmul.f32 %v1478_v44, %v1426_v4  ;;  %v417_v58 = vmul.f32 %v1464_v35, %v416_v47  ;;  %947 = vrsqrt.f32 %v1489_v51  ;;  %v534_v5 = vmul.f32 %v464_v60, %v1286_v12  ;;  %vm1557_vm13 = vmor %vm431_vm11, %vm432_vm12 }
  0xc7   : > { %v428_v57 = vmul.f32 0.5, %v427_v50  ;;  %v440_v48 = vmul.f32 %v1407_v52, %v439_v45  ;;  %v454_v21 = vsel %vm1512_vm7, %v1400_v0, %v450_v63  ;;  %vm421_vm14 = vweird.f32 %v1412_v55  ;;  %v270_v50 = vld [vmem:[%s248_s5 + $0x8] sm:$0xff] }
  0xc8   : > { %544 = vmatpush.xpose.msra.mxu0 %v537_v41  ;;  %794 = vmatpush.xpose.msra.mxu1 %v537_v41  ;;  %v407_v37 = vmul.f32 %v1478_v44, %v406_v54  ;;  %v418_v16 = vmul.f32 0.5, %v417_v58  ;;  %v533_v41 = vmul.f32 %v454_v21, %v1289_v13  ;;  %vm422_vm15 = vweird.f32 %v1464_v35 }
  0xc9   : > { %v318_v59 = vpop.xlane.xlu0 %317  ;;  %v274_v61 = vpop.xlane.xlu1 %273  ;;  %v429_v11 = vsub.f32 1.5, %v428_v57  ;;  %v444_v29 = vsel %vm1535_vm10, %v1407_v52, %v440_v48  ;;  %vm1581_vm0 = vmor %vm421_vm14, %vm422_vm15  ;;  %vm411_vm1 = vweird.f32 %v1426_v4  ;;  %vm412_vm2 = vweird.f32 %v1478_v44 }
  0xca   : > { %v1508_v6 = vpop.eup %943  ;;  %v1520_v39 = vmax.f32 %v318_v59, 1e-24  ;;  %v276_v62 = vpop.xlane.xlu2 %275  ;;  %v1531_v1 = vmax.f32 %v274_v61, 1e-24  ;;  %v408_v23 = vmul.f32 0.5, %v407_v37  ;;  %v419_v27 = vsub.f32 1.5, %v418_v16  ;;  %vm1603_vm3 = vmor %vm411_vm1, %vm412_vm2 }
  0xcb   : > { %v1524_v9 = vpop.eup %945  ;;  %v396_v17 = vmul.f32 %v1508_v6, %v1455_v3  ;;  %v1540_v22 = vmax.f32 %v276_v62, 1e-24  ;;  %v430_v33 = vmul.f32 %v1449_v46, %v429_v11  ;;  %v532_v36 = vmul.f32 %v444_v29, %v1292_v14 }
  0xcc   : > { %545 = vmatpush.xpose.msra.mxu0 %v536_v53  ;;  %795 = vmatpush.xpose.msra.mxu1 %v536_v53  ;;  %v386_v0 = vmul.f32 %v1524_v9, %v1473_v7  ;;  %949 = vrsqrt.f32 %v1520_v39  ;;  %v1547_v15 = vpop.eup %947  ;;  %v409_v13 = vsub.f32 1.5, %v408_v23  ;;  %v420_v42 = vmul.f32 %v1464_v35, %v419_v27 }
  0xcd   : > { %v397_v28 = vmul.f32 %v1508_v6, %v396_v17  ;;  %951 = vrsqrt.f32 %v1531_v1  ;;  %v376_v40 = vmul.f32 %v1547_v15, %v1489_v51  ;;  %v434_v38 = vsel %vm1557_vm13, %v1449_v46, %v430_v33 }
  0xce   : > { %953 = vrsqrt.f32 %v1540_v22  ;;  %v387_v52 = vmul.f32 %v1524_v9, %v386_v0  ;;  %v1115_v14 = vmov 0   ;;  %v531_v54 = vmul.f32 %v434_v38, %v1302_v18 }
  0xcf   : > { %v398_v53 = vmul.f32 0.5, %v397_v28  ;;  %918 = vset.pattern.permute.xlu1 %v1115_v14  ;;  %917 = vset.pattern.permute.xlu0 %v1115_v14  ;;  %v377_v45 = vmul.f32 %v1547_v15, %v376_v40  ;;  %v424_v57 = vsel %vm1581_vm0, %v1464_v35, %v420_v42  ;;  %v410_v58 = vmul.f32 %v1478_v44, %v409_v13 }
  0xd0   : > { %546 = vmatpush.xpose.msra.mxu0 %v535_v56  ;;  %796 = vmatpush.xpose.msra.mxu1 %v535_v56  ;;  %v388_v2 = vmul.f32 0.5, %v387_v52  ;;  %vm401_vm4 = vweird.f32 %v1455_v3  ;;  %vm402_vm5 = vweird.f32 %v1508_v6  ;;  %v530_v63 = vmul.f32 %v424_v57, %v1305_v19 }
  0xd1   : > { %570 = vperm.xlu0 %917, %v269_v43   ;;  %573 = vperm.xlu1 %918, %v270_v50   ;;  %v399_v56 = vsub.f32 1.5, %v398_v53  ;;  %v378_v59 = vmul.f32 0.5, %v377_v45  ;;  %v414_v61 = vsel %vm1603_vm3, %v1478_v44, %v410_v58  ;;  %vm1619_vm6 = vmor %vm401_vm4, %vm402_vm5  ;;  %vm391_vm7 = vweird.f32 %v1473_v7 }
  0xd2   : > { %v1577_v47 = vpop.eup %949  ;;  %v389_v8 = vsub.f32 1.5, %v388_v2  ;;  %vm392_vm8 = vweird.f32 %v1524_v9  ;;  %v529_v48 = vmul.f32 %v414_v61, %v1308_v20  ;;  %vm381_vm10 = vweird.f32 %v1489_v51 }
  0xd3   : > { %v1587_v46 = vpop.eup %951  ;;  %v366_v10 = vmul.f32 %v1577_v47, %v1520_v39  ;;  %v400_v3 = vmul.f32 %v1508_v6, %v399_v56  ;;  %v379_v62 = vsub.f32 1.5, %v378_v59  ;;  %vm1632_vm9 = vmor %vm391_vm7, %vm392_vm8  ;;  %vm382_vm11 = vweird.f32 %v1547_v15 }
  0xd4   : > { %547 = vmatpush.xpose.msra.mxu0 %v534_v5  ;;  %797 = vmatpush.xpose.msra.mxu1 %v534_v5  ;;  %v1591_v55 = vpop.eup %953  ;;  %v280_v35 = vmul.f32 %v1587_v46, %v1531_v1  ;;  %v390_v16 = vmul.f32 %v1524_v9, %v389_v8  ;;  %vm383_vm12 = vmor %vm381_vm10, %vm382_vm11  ;;  %vm371_vm13 = vweird.f32 %v1520_v39  ;;  %vm372_vm14 = vweird.f32 %v1577_v47 }
  0xd5   : > { %v290_v60 = vmul.f32 %v1591_v55, %v1540_v22  ;;  %v367_v4 = vmul.f32 %v1577_v47, %v366_v10  ;;  %v404_v11 = vsel %vm1619_vm6, %v1508_v6, %v400_v3  ;;  %v380_v23 = vmul.f32 %v1547_v15, %v379_v62  ;;  %vm373_vm2 = vmor %vm371_vm13, %vm372_vm14 }
  0xd6   : > { %v281_v19 = vmul.f32 %v1587_v46, %v280_v35  ;;  %v528_v21 = vmul.f32 %v404_v11, %v1319_v24  ;;  %v394_v6 = vsel %vm1632_vm9, %v1524_v9, %v390_v16  ;;  %vm285_vm15 = vweird.f32 %v1531_v1 }
  0xd7   : > { %v291_v5 = vmul.f32 %v1591_v55, %v290_v60  ;;  %v368_v44 = vmul.f32 0.5, %v367_v4  ;;  %v384_v24 = vsel %vm383_vm12, %v1547_v15, %v380_v23  ;;  %vm286_vm0 = vweird.f32 %v1587_v46 }
  0xd8   : > { %548 = vmatpush.xpose.msra.mxu0 %v533_v41  ;;  %798 = vmatpush.xpose.msra.mxu1 %v533_v41  ;;  %v282_v17 = vmul.f32 0.5, %v281_v19  ;;  %v527_v41 = vmul.f32 %v394_v6, %v1322_v25  ;;  %vm295_vm1 = vweird.f32 %v1540_v22  ;;  %vm296_vm3 = vweird.f32 %v1591_v55  ;;  %vm287_vm4 = vmor %vm285_vm15, %vm286_vm0 }
  0xd9   : > { %v292_v20 = vmul.f32 0.5, %v291_v5  ;;  %v369_v12 = vsub.f32 1.5, %v368_v44  ;;  %v526_v39 = vmul.f32 %v384_v24, %v1325_v26  ;;  %vm297_vm5 = vmor %vm295_vm1, %vm296_vm3  ;;  %v565_v33 = vlaneseq }
  0xda   : > { %v283_v51 = vsub.f32 1.5, %v282_v17  ;;  %v567_v13 = vstv %s779_s6  ;;  %s1009_s6 = scalar_lea.hbm %s1726_s3, 144 }
  0xdb   : > { %v293_v0 = vsub.f32 1.5, %v292_v20  ;;  %v370_v27 = vmul.f32 %v1577_v47, %v369_v12  ;;  %v566_v34 = vand.u32 127, %v565_v33  ;;  %p1011_p13 = scmp.lt.s32.totalorder %s1009_s6, %s1005_s4 }
  0xdc   : > { %549 = vmatpush.xpose.msra.mxu0 %v532_v36  ;;  %799 = vmatpush.xpose.msra.mxu1 %v532_v36  ;;  %v284_v9 = vmul.f32 %v1587_v46, %v283_v51 }
  0xdd   : > { %v294_v25 = vmul.f32 %v1591_v55, %v293_v0  ;;  %v374_v1 = vsel %vm373_vm2, %v1577_v47, %v370_v27  ;;  %v568_v52 = vadd.s32 %v567_v13, %v566_v34  ;;  %p1012_p0 = por %p1011_p13, %p1010_p11 }
  0xde   : > { %v525_v22 = vmul.f32 %v374_v1, %v1340_v30  ;;  %v288_v15 = vsel %vm287_vm4, %v1587_v46, %v284_v9  ;;  %v1116_v30 = vmov 0.0  }
  0xdf   : > { %v298_v28 = vsel %vm297_vm5, %v1591_v55, %v294_v25  ;;  %v299_v26 = vmul.f32 %v288_v15, %v1342_v31  ;;  %p1013_p1 = pnand %p1012_p0, %p1008_p10 }
  0xe0   : > { %550 = vmatpush.xpose.msra.mxu0 %v531_v54  ;;  %800 = vmatpush.xpose.msra.mxu1 %v531_v54  ;;  %v300_v29 = vmul.f32 %v298_v28, %v1344_v32 }
  0xe4   : > { %551 = vmatpush.xpose.msra.mxu0 %v530_v63  ;;  %801 = vmatpush.xpose.msra.mxu1 %v530_v63 }
  0xe8   : > { %552 = vmatpush.xpose.msra.mxu0 %v529_v48  ;;  %802 = vmatpush.xpose.msra.mxu1 %v529_v48 }
  0xec   : > { %553 = vmatpush.xpose.msra.mxu0 %v528_v21  ;;  %803 = vmatpush.xpose.msra.mxu1 %v528_v21 }
  0xf0   : > { %554 = vmatpush.xpose.msra.mxu0 %v527_v41  ;;  %804 = vmatpush.xpose.msra.mxu1 %v527_v41 }
  0xf4   : > { %555 = vmatpush.xpose.msra.mxu0 %v526_v39  ;;  %805 = vmatpush.xpose.msra.mxu1 %v526_v39 }
  0xf8   : > { %556 = vmatpush.xpose.msra.mxu0 %v525_v22  ;;  %806 = vmatpush.xpose.msra.mxu1 %v525_v22 }
  0xfb   : > { %557 = vmatmul.f32.vlgmr.msra.gmra.mxu0 %v299_v26  ;;  %560 = vmatmul.f32.vlgmr.msra.gmra.mxu1 %v300_v29 }
 0x143   : > { %v571_v40 = vpop.permute.xlu0 %570  ;;  %v574_v53 = vpop.permute.xlu1 %573 }
 0x144   : > { %vm575_vm6 = vcmp.eq.s32.totalorder %v568_v52, %v571_v40  ;;  %vm576_vm7 = vcmp.eq.s32.totalorder %v568_v52, %v574_v53 }
 0x145   : > { %v780_v36 = vsel %vm575_vm6, 1.0, %v1116_v30  ;;  %v781_v31 = vsel %vm576_vm7, 1.0, %v1116_v30 }
 0x178   : > { %v558_v38 = vpop.f32.mrf.mxu0  ;;  %v1662_v43 = vpop.f32.mrf.mxu1 }
 0x179   : > { %v581_v42 = vmul.f32 %v780_v36, %v558_v38  ;;  %v582_v32 = vmul.f32 %v781_v31, %v1662_v43 }
 0x17b   : > { %583 = vadd.xlane.f32.xlu2 %v581_v42 }
 0x183   : > { %585 = vadd.xlane.f32.xlu2 %v582_v32 }
 0x1ee   : > { %v584_v50 = vpop.xlane.xlu2 %583 }
 0x1ef   : > { %v782_v47 = vclamps-f32 %v584_v50, 0.9999 }
 0x1f1   : > { %v591_v49 = vmul.f32 %v782_v47, %v782_v47  ;;  %v621_v5 = vmul.f32 0.87758255, %v782_v47 }
 0x1f3   : > { %v593_v14 = vsub.f32 1.0, %v591_v49 }
 0x1f5   : > { %v595_v46 = vmax.f32 %v593_v14, 0.0 }
 0x1f6   : > { %v586_v2 = vpop.xlane.xlu2 %585 }
 0x1f7   : > { %955 = vrsqrt.f32 %v595_v46  ;;  %v783_v45 = vclamps-f32 %v586_v2, 0.9999  ;;  %vm604_vm8 = vcmp.eq.f32.partialorder %v595_v46, inf  ;;  %v607_v4 = vand.u32 2147483648, %v595_v46 }
 0x1f8   : > { %vm606_vm9 = vcmp.eq.f32.partialorder %v595_v46, 0.0 }
 0x1f9   : > { %v592_v54 = vmul.f32 %v783_v45, %v783_v45  ;;  %v622_v23 = vmul.f32 0.87758255, %v783_v45 }
 0x1fb   : > { %v594_v55 = vsub.f32 1.0, %v592_v54 }
 0x1fd   : > { %v956_v56 = vpop.eup %955  ;;  %v596_v57 = vmax.f32 %v594_v55, 0.0 }
 0x1fe   : > { %v598_v10 = vmul.f32 %v956_v56, %v595_v46 }
 0x1ff   : > { %957 = vrsqrt.f32 %v596_v57  ;;  %vm616_vm10 = vcmp.eq.f32.partialorder %v596_v57, inf  ;;  %v619_v20 = vand.u32 2147483648, %v596_v57  ;;  %vm618_vm11 = vcmp.eq.f32.partialorder %v596_v57, 0.0 }
 0x200   : > { %v599_v58 = vmul.f32 %v956_v56, %v598_v10 }
 0x202   : > { %v600_v18 = vmul.f32 0.5, %v599_v58 }
 0x204   : > { %v601_v59 = vsub.f32 1.5, %v600_v18 }
 0x205   : > { %v958_v35 = vpop.eup %957 }
 0x206   : > { %v602_v60 = vmul.f32 %v956_v56, %v601_v59  ;;  %v610_v63 = vmul.f32 %v958_v35, %v596_v57 }
 0x208   : > { %v603_v8 = vmul.f32 %v602_v60, %v595_v46  ;;  %v611_v61 = vmul.f32 %v958_v35, %v610_v63 }
 0x20a   : > { %v605_v3 = vsel %vm604_vm8, %v595_v46, %v603_v8  ;;  %v612_v19 = vmul.f32 0.5, %v611_v61 }
 0x20b   : > { %v608_v37 = vsel %vm606_vm9, %v607_v4, %v605_v3 }
 0x20c   : > { %v623_v48 = vmul.f32 0.47942555, %v608_v37  ;;  %v613_v62 = vsub.f32 1.5, %v612_v19 }
 0x20e   : > { %v625_v44 = vsub.f32 %v621_v5, %v623_v48  ;;  %v614_v11 = vmul.f32 %v958_v35, %v613_v62 }
 0x210   : > { %v627_v16 = vsub.f32 %v625_v44, %v782_v47  ;;  %v615_v7 = vmul.f32 %v614_v11, %v596_v57 }
 0x212   : > { %v629_v17 = vmul.f32 %v780_v36, %v627_v16  ;;  %v617_v21 = vsel %vm616_vm10, %v596_v57, %v615_v7 }
 0x213   : > { %v620_v6 = vsel %vm618_vm11, %v619_v20, %v617_v21 }
 0x214   : > { %v631_v12 = vadd.f32 %v629_v17, %v558_v38  ;;  %v624_v51 = vmul.f32 0.47942555, %v620_v6 }
 0x216   : > { %v633_v0 = vmul.f32 30.0, %v631_v12  ;;  %v626_v41 = vsub.f32 %v622_v23, %v624_v51 }
 0x218   : > { %635 = vst [vmem:[%s236_s15] sm:$0xff] %v633_v0  ;;  %v628_v24 = vsub.f32 %v626_v41, %v783_v45 }
 0x21a   : > { %v630_v27 = vmul.f32 %v781_v31, %v628_v24 }
 0x21c   : > { %v632_v39 = vadd.f32 %v630_v27, %v1662_v43 }
 0x21e   : > { %v634_v9 = vmul.f32 30.0, %v632_v39 }
 0x220   : > { %636 = vst [vmem:[%s236_s15 + $0x8] sm:$0xff] %v634_v9 }
 0x221   : > { %1016 = shalt.err (!%p1013_p1)
}
 0x222   : > { %s1117_s27 = smov 128   ;;  %s1118_s29 = smov 384  }
 0x223   : > { %s1119_s23 = smov 8  }
 0x224   : > { %810 = dma.vmem_to_hbm [thread:$0]  (%p1222_p12), %s653_s25, 256, %s655_s26, %s638_s19, %s1117_s27, %s1118_s29, %s1119_s23  }
 0x225 PF: > { %p821_p4 = scmp.ge.s32.totalorder %s1111_s22, 2  ;;  %s669_s15 = sand.u32 1, %s1071_s12  }
 0x226   : > { %s670_s18 = scalar_lea.sflag [#allocation4], %s669_s15 }
 0x227   : > { %p817_p5 = pnand %p821_p4, %p1235_p2 }
 0x229   : > { %p818_p6 = pneg %p817_p5 }
 0x22b   : > { %1066 = dma.done.wait (%p818_p6), %s670_s18, 256  }
 0x22c   : > { %1068 = vsyncadd (%p818_p6), %s670_s18, 4294967040  ;;  %s19_s22 = sadd.s32 1, %s1111_s22   ;;  %s1761_s18 = sld [smem:[#allocation8_spill]] }
 0x22d   : > { %p16_p8 = scmp.ge.s32.totalorder %s19_s22, 11   ;;  %s1762_s19 = sld [smem:[#allocation9_spill]] }
 0x22e   : > { %s1763_s20 = sld [smem:[#allocation10_spill]]  ;;  %s1765_s12 = smov %s1075_s13 }
 0x22f   : > { %s1764_s21 = sld [smem:[#allocation11_spill]]  ;;  %s1766_s13 = smov %s1079_s14 }
 0x230   : > { %s1767_s14 = smov %s1230_s9  ;;  %s1768_s15 = smov %s1087_s16 }
 0x231   : > { %s1769_s16 = smov %s1091_s17  ;;  %s1770_s17 = smov %s1227_s8 }
 0x232   :  { %18 = sbr.rel (!%p16_p8) target bundleno = 9 (0x9), region = 83 }
 0x237   :  { %676 = vsyncpa [#allocation3], 1 }
 0x238   :  { %678 = vsyncpa [#allocation3 + $0x1], 1 }
 0x239   :  { %679 = vsyncpa [#allocation4], 1 }
 0x23a   :  { %681 = vsyncpa [#allocation4 + $0x1], 1 }

</bundles_post_ra>
